<compile_context>
chip_gen: v7x
topology: tpu7x:2x2x1
jax: 0.10.0
libtpu: 0.0.40
codegen_flags: <defaults>
</compile_context>

<pallas_src>
import functools

import jax
import jax.numpy as jnp
from jax.experimental import pallas as pl
from jax.experimental.pallas import tpu as pltpu

LANE = 128  # pad every feature dimension to a full vreg lane width


def mlpnet_kernel(x_ref, w_ref, b_ref, out_ref, *, action_space_size):
    x = x_ref[...]                                                     # (Bp, 128) f32

    # layer1 + ReLU  (weight rows [0, 128))
    h1 = jnp.dot(x, w_ref[0:LANE, :], preferred_element_type=jnp.float32) + b_ref[0:1, :]
    h1 = jnp.maximum(h1, 0.0)

    # layer2 + ReLU  (weight rows [128, 256))
    h2 = jnp.dot(h1, w_ref[LANE:2 * LANE, :], preferred_element_type=jnp.float32) + b_ref[1:2, :]
    h2 = jnp.maximum(h2, 0.0)

    # fused policy+value head (weight rows [256, 384)):
    #   lanes [0, A) = policy logits, lane A = value pre-activation, rest = 0 padding
    heads = jnp.dot(h2, w_ref[2 * LANE:3 * LANE, :],
                    preferred_element_type=jnp.float32) + b_ref[2:3, :]

    lane = jax.lax.broadcasted_iota(jnp.int32, heads.shape, dimension=1)
    is_policy = lane < action_space_size

    # numerically stable log_softmax restricted to the policy lanes
    neg_big = jnp.float32(-1e30)
    masked_logits = jnp.where(is_policy, heads, neg_big)
    m = jnp.max(masked_logits, axis=1, keepdims=True)
    shifted = heads - m
    lse = jnp.log(jnp.sum(jnp.exp(jnp.where(is_policy, shifted, neg_big)),
                          axis=1, keepdims=True))
    log_pi = shifted - lse

    # single lane-dense store: policy lanes get log_pi, value lane gets tanh(value)
    out_ref[...] = jnp.where(lane == action_space_size, jnp.tanh(heads), log_pi)


def mlpnet_forward(x, packed_params, action_space_size):
    """x: (B, ...) observation (flattened to (B, D_in)). Returns (log_pi (B, A), v (B, 1))."""
    B = x.shape[0]
    x2d = x.reshape(B, -1).astype(jnp.float32)
    d_in = x2d.shape[1]
    assert d_in <= LANE and action_space_size + 1 <= LANE

    w_all, b_all = packed_params                    # (3*LANE, LANE), (8, LANE)

    # pad batch to a multiple of 8 sublanes (padded rows are harmless and sliced off below)
    b_pad = max(8, ((B + 7) // 8) * 8)
    x_pad = jnp.zeros((b_pad, LANE), jnp.float32).at[:B, :d_in].set(x2d)

    flops = 2 * b_pad * 3 * LANE * LANE
    transcendentals = b_pad * (2 * LANE + 1)        # exp + tanh (+ log)
    bytes_accessed = 4 * (x_pad.size + w_all.size + b_all.size + b_pad * LANE)

    vmem_spec = pl.BlockSpec(memory_space=pltpu.VMEM)
    out = pl.pallas_call(
        functools.partial(mlpnet_kernel, action_space_size=action_space_size),
        out_shape=jax.ShapeDtypeStruct((b_pad, LANE), jnp.float32),
        in_specs=[vmem_spec, vmem_spec, vmem_spec],
        out_specs=vmem_spec,
        cost_estimate=pl.CostEstimate(flops=flops,
                                      transcendentals=transcendentals,
                                      bytes_accessed=bytes_accessed),
    )(x_pad, w_all, b_all)
    # TODO(synk): for large batches add a ("parallel",) batch grid axis so both v7x TCs are used.

    log_pi = out[:B, :action_space_size]
    v = out[:B, action_space_size:action_space_size + 1]
    return log_pi, v


def init_params(key, input_dim, hidden, action_space_size):
    """Deterministic init mimicking nn.Linear default (uniform +- 1/sqrt(fan_in)).
    Returns the 4 (w, b) pairs with w stored as (in, out)."""
    h1, h2 = hidden
    dims = [(input_dim, h1), (h1, h2), (h2, action_space_size), (h2, 1)]
    raw = []
    for (fan_in, fan_out) in dims:
        key, kw, kb = jax.random.split(key, 3)
        bound = 1.0 / jnp.sqrt(fan_in)
        w = jax.random.uniform(kw, (fan_in, fan_out), jnp.float32, -bound, bound)
        b = jax.random.uniform(kb, (fan_out,), jnp.float32, -bound, bound)
        raw.append((w, b))
    return raw


def pack_params(raw, input_dim, hidden, action_space_size):
    """Pack the 8 small tensors into 2 lane-padded contiguous buffers (fewer, larger DMAs)."""
    (w1, b1), (w2, b2), (wp, bp), (wv, bv) = raw
    h1, h2 = hidden
    assert max(input_dim, h1, h2, action_space_size + 1) <= LANE

    w_all = jnp.zeros((3 * LANE, LANE), jnp.float32)
    w_all = w_all.at[0:input_dim, 0:h1].set(w1)
    w_all = w_all.at[LANE:LANE + h1, 0:h2].set(w2)
    w_all = w_all.at[2 * LANE:2 * LANE + h2, 0:action_space_size].set(wp)
    w_all = w_all.at[2 * LANE:2 * LANE + h2,
                     action_space_size:action_space_size + 1].set(wv)

    b_all = jnp.zeros((8, LANE), jnp.float32)
    b_all = b_all.at[0, 0:h1].set(b1)
    b_all = b_all.at[1, 0:h2].set(b2)
    b_all = b_all.at[2, 0:action_space_size].set(bp)
    b_all = b_all.at[2, action_space_size].set(bv[0])
    return (w_all, b_all)


def mlpnet_reference(x, raw):
    """Pure-JAX reference of the PyTorch forward (for correctness checking)."""
    B = x.shape[0]
    x2d = x.reshape(B, -1).astype(jnp.float32)
    (w1, b1), (w2, b2), (wp, bp), (wv, bv) = raw
    h1 = jnp.maximum(x2d @ w1 + b1, 0.0)
    h2 = jnp.maximum(h1 @ w2 + b2, 0.0)
    log_pi = jax.nn.log_softmax(h2 @ wp + bp, axis=1)
    v = jnp.tanh(h2 @ wv + bv)
    return log_pi, v


if __name__ == "__main__":
    # observation_size = (4, 4) -> input_dim = 16 ; action_space_size = 10 ; hidden = [64, 32]
    observation_size = (4, 4)
    action_space_size = 10
    linear_hidden = [64, 32]
    batch = 2

    key = jax.random.PRNGKey(0)
    key, kx = jax.random.split(key)
    x = jax.random.normal(kx, (batch,) + observation_size, dtype=jnp.float32)

    input_dim = observation_size[0] * observation_size[1]
    raw_params = init_params(jax.random.PRNGKey(42), input_dim, linear_hidden, action_space_size)
    packed = pack_params(raw_params, input_dim, linear_hidden, action_space_size)

    log_pi, v = mlpnet_forward(x, packed, action_space_size)
    jax.block_until_ready((log_pi, v))

    # shape / semantics checks
    assert log_pi.shape == (batch, action_space_size)
    assert v.shape == (batch, 1)
    assert jnp.allclose(jnp.sum(jnp.exp(log_pi), axis=1), 1.0, atol=1e-5)
    assert jnp.all(jnp.abs(v) <= 1.0)

    # numerical check against pure-JAX reference of the PyTorch module
    ref_log_pi, ref_v = mlpnet_reference(x, raw_params)
    assert jnp.allclose(log_pi, ref_log_pi, atol=1e-5, rtol=1e-5)
    assert jnp.allclose(v, ref_v, atol=1e-5, rtol=1e-5)

    print("KERNEL_OK")
</pallas_src>

<mosaic_0001>
module attributes {stable_mosaic.version = 11 : i64} {
  func.func @mlpnet_kernel(%arg0: memref<8x128xf32, #tpu.memory_space<vmem>>, %arg1: memref<384x128xf32, #tpu.memory_space<vmem>>, %arg2: memref<8x128xf32, #tpu.memory_space<vmem>>, %arg3: memref<8x128xf32, #tpu.memory_space<vmem>>) attributes {dimension_semantics = [], scalar_prefetch = 0 : i64, scratch_operands = 0 : i64, tpu.core_type = #tpu.core_type<tc>} {
    %c0 = arith.constant 0 : index
    %c0_0 = arith.constant 0 : index
    %0 = vector.load %arg0[%c0, %c0_0] : memref<8x128xf32, #tpu.memory_space<vmem>>, vector<8x128xf32>
    %c0_1 = arith.constant 0 : index
    %c0_2 = arith.constant 0 : index
    %1 = vector.load %arg1[%c0_1, %c0_2] : memref<384x128xf32, #tpu.memory_space<vmem>>, vector<128x128xf32>
    %cst = arith.constant dense<0.000000e+00> : vector<8x128xf32>
    %2 = tpu.matmul %0, %1, %cst {dimension_numbers = #tpu.dot_dimension_numbers<[1], [0], [0], [1], [0, 0, 1, 1], [], []>} : vector<8x128xf32>, vector<128x128xf32>, vector<8x128xf32> -> vector<8x128xf32>
    %c0_3 = arith.constant 0 : index
    %c0_4 = arith.constant 0 : index
    %3 = vector.load %arg2[%c0_3, %c0_4] : memref<8x128xf32, #tpu.memory_space<vmem>>, vector<1x128xf32>
    %4 = vector.broadcast %3 : vector<1x128xf32> to vector<8x128xf32>
    %5 = arith.addf %2, %4 : vector<8x128xf32>
    %cst_5 = arith.constant 0.000000e+00 : f32
    %6 = vector.broadcast %cst_5 : f32 to vector<8x128xf32>
    %7 = arith.maximumf %5, %6 : vector<8x128xf32>
    %c128 = arith.constant 128 : index
    %c0_6 = arith.constant 0 : index
    %8 = vector.load %arg1[%c128, %c0_6] : memref<384x128xf32, #tpu.memory_space<vmem>>, vector<128x128xf32>
    %cst_7 = arith.constant dense<0.000000e+00> : vector<8x128xf32>
    %9 = tpu.matmul %7, %8, %cst_7 {dimension_numbers = #tpu.dot_dimension_numbers<[1], [0], [0], [1], [0, 0, 1, 1], [], []>} : vector<8x128xf32>, vector<128x128xf32>, vector<8x128xf32> -> vector<8x128xf32>
    %c1 = arith.constant 1 : index
    %c0_8 = arith.constant 0 : index
    %10 = vector.load %arg2[%c1, %c0_8] : memref<8x128xf32, #tpu.memory_space<vmem>>, vector<1x128xf32>
    %11 = vector.broadcast %10 : vector<1x128xf32> to vector<8x128xf32>
    %12 = arith.addf %9, %11 : vector<8x128xf32>
    %cst_9 = arith.constant 0.000000e+00 : f32
    %13 = vector.broadcast %cst_9 : f32 to vector<8x128xf32>
    %14 = arith.maximumf %12, %13 : vector<8x128xf32>
    %c256 = arith.constant 256 : index
    %c0_10 = arith.constant 0 : index
    %15 = vector.load %arg1[%c256, %c0_10] : memref<384x128xf32, #tpu.memory_space<vmem>>, vector<128x128xf32>
    %cst_11 = arith.constant dense<0.000000e+00> : vector<8x128xf32>
    %16 = tpu.matmul %14, %15, %cst_11 {dimension_numbers = #tpu.dot_dimension_numbers<[1], [0], [0], [1], [0, 0, 1, 1], [], []>} : vector<8x128xf32>, vector<128x128xf32>, vector<8x128xf32> -> vector<8x128xf32>
    %c2 = arith.constant 2 : index
    %c0_12 = arith.constant 0 : index
    %17 = vector.load %arg2[%c2, %c0_12] : memref<8x128xf32, #tpu.memory_space<vmem>>, vector<1x128xf32>
    %18 = vector.broadcast %17 : vector<1x128xf32> to vector<8x128xf32>
    %19 = arith.addf %16, %18 : vector<8x128xf32>
    %20 = tpu.iota {dimensions = array<i32: 1>} : vector<8x128xi32>
    %c10_i32 = arith.constant 10 : i32
    %21 = vector.broadcast %c10_i32 : i32 to vector<8x128xi32>
    %22 = arith.cmpi slt, %20, %21 : vector<8x128xi32>
    %cst_13 = arith.constant -1.000000e+30 : f32
    %23 = vector.broadcast %cst_13 : f32 to vector<8x128xf32>
    %24 = arith.select %22, %19, %23 : vector<8x128xi1>, vector<8x128xf32>
    %cst_14 = arith.constant dense<0xFF800000> : vector<8xf32>
    %25 = vector.multi_reduction <maximumf>, %24, %cst_14 [1] : vector<8x128xf32> to vector<8xf32>
    %26 = vector.shape_cast %25 : vector<8xf32> to vector<8x1xf32>
    %27 = vector.broadcast %26 : vector<8x1xf32> to vector<8x128xf32>
    %28 = arith.subf %19, %27 : vector<8x128xf32>
    %cst_15 = arith.constant -1.000000e+30 : f32
    %29 = vector.broadcast %cst_15 : f32 to vector<8x128xf32>
    %30 = arith.select %22, %28, %29 : vector<8x128xi1>, vector<8x128xf32>
    %31 = math.exp %30 : vector<8x128xf32>
    %cst_16 = arith.constant dense<0.000000e+00> : vector<8xf32>
    %32 = vector.multi_reduction <add>, %31, %cst_16 [1] : vector<8x128xf32> to vector<8xf32>
    %33 = vector.shape_cast %32 : vector<8xf32> to vector<8x1xf32>
    %34 = math.log %33 : vector<8x1xf32>
    %35 = vector.broadcast %34 : vector<8x1xf32> to vector<8x128xf32>
    %36 = arith.subf %28, %35 : vector<8x128xf32>
    %c10_i32_17 = arith.constant 10 : i32
    %37 = vector.broadcast %c10_i32_17 : i32 to vector<8x128xi32>
    %38 = arith.cmpi eq, %20, %37 : vector<8x128xi32>
    %39 = math.tanh %19 : vector<8x128xf32>
    %40 = arith.select %38, %39, %36 : vector<8x128xi1>, vector<8x128xf32>
    %c0_18 = arith.constant 0 : index
    %c0_19 = arith.constant 0 : index
    %41 = vector.load %arg3[%c0_18, %c0_19] : memref<8x128xf32, #tpu.memory_space<vmem>>, vector<8x128xf32>
    tpu.vector_store %arg3[%c0_18, %c0_19], %40 {strides = array<i32>} : memref<8x128xf32, #tpu.memory_space<vmem>>, vector<8x128xf32>,
    return
  }
}

</mosaic_0001>

<bundles_post_ra>
// kernel: tpu_custom_call.1
= control target key start
LH: loop header
LB: loop body
LE: loop exit
PB: predicated region body
PF: predicated region fallthrough
CT: control target
= control target key end

     0   :  { %8 = vsyncpa [#allocation3], 0  ;;  %s810_s0 = inlined_call_operand.hbm [shape: f32[8,128], index: 0, kind: input, shape index: {}]   ;;  %s811_s1 = inlined_call_operand.hbm [shape: f32[384,128], index: 1, kind: input, shape index: {}]   ;;  %s812_s2 = inlined_call_operand.hbm [shape: f32[8,128], index: 2, kind: input, shape index: {}]   ;;  %s813_s3 = inlined_call_operand.hbm [shape: f32[8,128], index: 3, kind: output, shape index: {}]  }
   0x1   :  { %9 = vsyncpa [#allocation6], 0 }
   0x2   :  { %10 = vsyncpa [#allocation4], 0  ;;  %s703_s12 = smov [#allocation5]   ;;  %s609_s16 = scalar_lea.hbm %s811_s1, 6144 }
   0x3   :  { %s26_s13 = sshll.u32 %s703_s12, 4  ;;  %p610_p0 = scmp.ne.s32.totalorder %s811_s1, %s609_s16  ;;  %s27_s13 = int_to_ptr.vmem [resolvable:$true] %s26_s13 }
   0x4   :  { %p613_p1 = scmp.lt.u32.totalorder %s609_s16, %s811_s1 }
   0x6   :  { %p615_p2 = pnand %p613_p1, %p610_p0 }
   0x8   :  { %618 = shalt.err (!%p615_p2)
}
   0x9   :  { %s619_s21 = scalar_lea.vmem %s27_s13, 6144  ;;  %p624_p4 = scmp.lt.s32.totalorder %s27_s13, %s27_s13 }
   0xa   :  { %p620_p3 = scmp.ne.s32.totalorder %s27_s13, %s619_s21  ;;  %p625_p5 = scmp.lt.s32.totalorder %s619_s21, %s619_s21 }
   0xc   :  { %p626_p6 = por %p625_p5, %p624_p4 }
   0xe   :  { %p627_p7 = pnand %p626_p6, %p620_p3 }
  0x10   :  { %630 = shalt.err (!%p627_p7)
}
  0x11   :  { %s704_s22 = smov 128   ;;  %s705_s23 = smov 8  }
  0x12   :  { %32 = dma.hbm_to_vmem [thread:$0]  %s811_s1, 6144, %s27_s13, [#allocation6], %s704_s22, %s704_s22, %s705_s23  }
  0x13   :  { %s706_s26 = smov [#allocation2]   ;;  %s707_s28 = smov [#allocation7]  }
  0x14   :  { %s17_s27 = sshll.u32 %s706_s26, 4  ;;  %s39_s29 = sshll.u32 %s707_s28, 4  ;;  %s18_s27 = int_to_ptr.vmem [resolvable:$true] %s17_s27  ;;  %s40_s29 = int_to_ptr.vmem [resolvable:$true] %s39_s29 }
  0x15   :  { %s631_s5 = scalar_lea.hbm %s810_s0, 128 }
  0x16   :  { %p632_p8 = scmp.ne.s32.totalorder %s810_s0, %s631_s5  ;;  %p635_p9 = scmp.lt.u32.totalorder %s631_s5, %s810_s0 }
  0x18   :  { %p637_p10 = pnand %p635_p9, %p632_p8 }
  0x1a   :  { %640 = shalt.err (!%p637_p10)
}
  0x1b   :  { %s641_s1 = scalar_lea.vmem %s18_s27, 128  ;;  %p646_p12 = scmp.lt.s32.totalorder %s18_s27, %s18_s27 }
  0x1c   :  { %p642_p11 = scmp.ne.s32.totalorder %s18_s27, %s641_s1  ;;  %p647_p13 = scmp.lt.s32.totalorder %s641_s1, %s641_s1 }
  0x1e   :  { %p648_p0 = por %p647_p13, %p646_p12 }
  0x20   :  { %p649_p1 = pnand %p648_p0, %p642_p11 }
  0x22   :  { %652 = shalt.err (!%p649_p1)
}
  0x23   :  { %20 = dma.hbm_to_vmem [thread:$0]  %s810_s0, 128, %s18_s27, [#allocation3]  }
  0x24   :  { %s653_s14 = scalar_lea.hbm %s812_s2, 128 }
  0x25   :  { %p654_p2 = scmp.ne.s32.totalorder %s812_s2, %s653_s14  ;;  %p657_p3 = scmp.lt.u32.totalorder %s653_s14, %s812_s2 }
  0x27   :  { %p659_p4 = pnand %p657_p3, %p654_p2 }
  0x29   :  { %662 = shalt.err (!%p659_p4)
}
  0x2a   :  { %s663_s19 = scalar_lea.vmem %s40_s29, 128  ;;  %p668_p6 = scmp.lt.s32.totalorder %s40_s29, %s40_s29 }
  0x2b   :  { %p664_p5 = scmp.ne.s32.totalorder %s40_s29, %s663_s19  ;;  %p669_p7 = scmp.lt.s32.totalorder %s663_s19, %s663_s19 }
  0x2d   :  { %p670_p8 = por %p669_p7, %p668_p6 }
  0x2f   :  { %p671_p9 = pnand %p670_p8, %p664_p5 }
  0x31   :  { %674 = shalt.err (!%p671_p9)
}
  0x32   :  { %42 = dma.hbm_to_vmem [thread:$0]  %s812_s2, 128, %s40_s29, [#allocation6]  }
  0x33   :  { %697 = dma.done.wait [#allocation3], 128  }
  0x34   :  { %698 = vsyncadd [#allocation3], 4294967168 }
  0x35   :  { %699 = dma.done.wait [#allocation6], 6272  }
  0x36   :  { %700 = vsyncadd [#allocation6], 4294961024  ;;  %v708_v0 = vmov 0.0|0.0   ;;  %vm709_vm0 = vmmov 0   ;;  %v710_v1 = vmov 0.0   ;;  %v53_v2 = vld [vmem:[#allocation5] sm:$0xff] }
  0x37   :  { %522 = vmatprep.subr.bf16.mxu0 %v708_v0  ;;  %449 = vmatprep.mubr.msk.f32.mxu0 %vm709_vm0, %v710_v1  ;;  %v54_v3 = vld [vmem:[#allocation5 + $0x8] sm:$0xff]  ;;  %v55_v4 = vld [vmem:[#allocation5 + $0x10] sm:$0xff]  ;;  %v56_v6 = vld [vmem:[#allocation5 + $0x18] sm:$0xff]  ;;  %s711_s2 = smov [#allocation8]  }
  0x38   :  { %546 = vmatprep.subr.bf16.mxu1 %v708_v0  ;;  %484 = vmatprep.mubr.msk.f32.mxu1 %vm709_vm0, %v710_v1  ;;  %v523_v5 = vpack.c.bf16 %v54_v3, %v53_v2  ;;  %v526_v7 = vpack.c.bf16 %v56_v6, %v55_v4  ;;  %v57_v8 = vld [vmem:[#allocation5 + $0x20] sm:$0xff]  ;;  %v58_v9 = vld [vmem:[#allocation5 + $0x28] sm:$0xff]  ;;  %v147_v12 = vld [vmem:[#allocation5 + $0x90] sm:$0xff]  ;;  %s353_s21 = sshll.u32 %s711_s2, 4  ;;  %s354_s21 = int_to_ptr.vmem [resolvable:$true] %s353_s21 }
  0x39   :  { %v145_v10 = vld [vmem:[#allocation5 + $0x80] sm:$0xff]  ;;  %v146_v11 = vld [vmem:[#allocation5 + $0x88] sm:$0xff]  ;;  %v148_v13 = vld [vmem:[#allocation5 + $0x98] sm:$0xff]  ;;  %v529_v14 = vpack.c.bf16 %v58_v9, %v57_v8  ;;  %s675_s22 = scalar_lea.vmem %s354_s21, 128  ;;  %p680_p11 = scmp.lt.s32.totalorder %s354_s21, %s354_s21 }
  0x3a   :  { %524 = vmatpush3.bf16.msra.mxu0 %v523_v5  ;;  %v547_v15 = vpack.c.bf16 %v146_v11, %v145_v10  ;;  %v59_v16 = vld [vmem:[#allocation5 + $0x30] sm:$0xff]  ;;  %v60_v17 = vld [vmem:[#allocation5 + $0x38] sm:$0xff]  ;;  %v550_v18 = vpack.c.bf16 %v148_v13, %v147_v12  ;;  %v149_v19 = vld [vmem:[#allocation5 + $0xa0] sm:$0xff]  ;;  %p676_p10 = scmp.ne.s32.totalorder %s354_s21, %s675_s22  ;;  %p681_p12 = scmp.lt.s32.totalorder %s675_s22, %s675_s22 }
  0x3b   :  { %525 = vmatprep.subr.bf16.mxu0 %v708_v0  ;;  %v150_v20 = vld [vmem:[#allocation5 + $0xa8] sm:$0xff]  ;;  %v532_v21 = vpack.c.bf16 %v60_v17, %v59_v16  ;;  %v61_v22 = vld [vmem:[#allocation5 + $0x40] sm:$0xff]  ;;  %v151_v25 = vld [vmem:[#allocation5 + $0xb0] sm:$0xff] }
  0x3c   :  { %548 = vmatpush3.bf16.msra.mxu1 %v547_v15  ;;  %v62_v23 = vld [vmem:[#allocation5 + $0x48] sm:$0xff]  ;;  %v553_v24 = vpack.c.bf16 %v150_v20, %v149_v19  ;;  %v152_v26 = vld [vmem:[#allocation5 + $0xb8] sm:$0xff]  ;;  %v63_v28 = vld [vmem:[#allocation5 + $0x50] sm:$0xff]  ;;  %p682_p13 = por %p681_p12, %p680_p11 }
  0x3d   :  { %549 = vmatprep.subr.bf16.mxu1 %v708_v0  ;;  %v535_v27 = vpack.c.bf16 %v62_v23, %v61_v22  ;;  %v64_v29 = vld [vmem:[#allocation5 + $0x58] sm:$0xff]  ;;  %v556_v30 = vpack.c.bf16 %v152_v26, %v151_v25  ;;  %v153_v31 = vld [vmem:[#allocation5 + $0xc0] sm:$0xff]  ;;  %v154_v32 = vld [vmem:[#allocation5 + $0xc8] sm:$0xff]  ;;  %v328_v22 = vlaneseq }
  0x3e   :  { %527 = vmatpush3.bf16.msra.mxu0 %v526_v7  ;;  %v538_v33 = vpack.c.bf16 %v64_v29, %v63_v28  ;;  %v65_v34 = vld [vmem:[#allocation5 + $0x60] sm:$0xff]  ;;  %v66_v35 = vld [vmem:[#allocation5 + $0x68] sm:$0xff]  ;;  %v559_v36 = vpack.c.bf16 %v154_v32, %v153_v31  ;;  %v155_v37 = vld [vmem:[#allocation5 + $0xd0] sm:$0xff]  ;;  %p683_p0 = pnand %p682_p13, %p676_p10 }
  0x3f   :  { %528 = vmatprep.subr.bf16.mxu0 %v708_v0  ;;  %v156_v38 = vld [vmem:[#allocation5 + $0xd8] sm:$0xff]  ;;  %v541_v39 = vpack.c.bf16 %v66_v35, %v65_v34  ;;  %v67_v40 = vld [vmem:[#allocation5 + $0x70] sm:$0xff]  ;;  %v157_v43 = vld [vmem:[#allocation5 + $0xe0] sm:$0xff]  ;;  %v329_v23 = vand.u32 127, %v328_v22 }
  0x40   :  { %551 = vmatpush3.bf16.msra.mxu1 %v550_v18  ;;  %v68_v41 = vld [vmem:[#allocation5 + $0x78] sm:$0xff]  ;;  %v562_v42 = vpack.c.bf16 %v156_v38, %v155_v37  ;;  %v158_v44 = vld [vmem:[#allocation5 + $0xe8] sm:$0xff]  ;;  %v159_v48 = vld [vmem:[#allocation5 + $0xf0] sm:$0xff] }
  0x41   :  { %552 = vmatprep.subr.bf16.mxu1 %v708_v0  ;;  %v544_v45 = vpack.c.bf16 %v68_v41, %v67_v40  ;;  %v565_v46 = vpack.c.bf16 %v158_v44, %v157_v43  ;;  %v52_v47 = vld [vmem:[#allocation2] sm:$0xff]  ;;  %v237_v51 = vld [vmem:[#allocation5 + $0x100] sm:$0xff]  ;;  %v238_v52 = vld [vmem:[#allocation5 + $0x108] sm:$0xff]  ;;  %vm330_vm1 = vcmp.lt.s32.totalorder %v329_v23, 10  ;;  %vm343_vm2 = vcmp.eq.s32.totalorder %v329_v23, 10 }
  0x42   :  { %530 = vmatpush3.bf16.msra.mxu0 %v529_v14  ;;  %v160_v49 = vld [vmem:[#allocation5 + $0xf8] sm:$0xff]  ;;  %v239_v53 = vld [vmem:[#allocation5 + $0x110] sm:$0xff]  ;;  %v571_v54 = vpack.c.bf16 %v238_v52, %v237_v51  ;;  %v241_v57 = vld [vmem:[#allocation5 + $0x120] sm:$0xff] }
  0x43   :  { %531 = vmatprep.subr.bf16.mxu0 %v708_v0  ;;  %v568_v50 = vpack.c.bf16 %v160_v49, %v159_v48  ;;  %v240_v55 = vld [vmem:[#allocation5 + $0x118] sm:$0xff]  ;;  %v242_v58 = vld [vmem:[#allocation5 + $0x128] sm:$0xff]  ;;  %v243_v60 = vld [vmem:[#allocation5 + $0x130] sm:$0xff] }
  0x44   :  { %554 = vmatpush3.bf16.msra.mxu1 %v553_v24  ;;  %v574_v56 = vpack.c.bf16 %v240_v55, %v239_v53  ;;  %v577_v59 = vpack.c.bf16 %v242_v58, %v241_v57  ;;  %v244_v61 = vld [vmem:[#allocation5 + $0x138] sm:$0xff]  ;;  %v245_v63 = vld [vmem:[#allocation5 + $0x140] sm:$0xff]  ;;  %v247_v3 = vld [vmem:[#allocation5 + $0x150] sm:$0xff] }
  0x45   :  { %555 = vmatprep.subr.bf16.mxu1 %v708_v0  ;;  %v580_v62 = vpack.c.bf16 %v244_v61, %v243_v60  ;;  %v248_v4 = vld [vmem:[#allocation5 + $0x158] sm:$0xff]  ;;  %v249_v6 = vld [vmem:[#allocation5 + $0x160] sm:$0xff]  ;;  %v250_v7 = vld [vmem:[#allocation5 + $0x168] sm:$0xff] }
  0x46   :  { %533 = vmatpush3.bf16.msra.mxu0 %v532_v21  ;;  %v586_v5 = vpack.c.bf16 %v248_v4, %v247_v3  ;;  %v589_v8 = vpack.c.bf16 %v250_v7, %v249_v6  ;;  %v363_v9 = vld [vmem:[#allocation7] ss:$0 sm:$0xff]  ;;  %v251_v14 = vld [vmem:[#allocation5 + $0x170] sm:$0xff]  ;;  %v252_v15 = vld [vmem:[#allocation5 + $0x178] sm:$0xff] }
  0x47   :  { %534 = vmatprep.subr.bf16.mxu0 %v708_v0  ;;  %v592_v16 = vpack.c.bf16 %v252_v15, %v251_v14  ;;  %v364_v17 = vld [vmem:[#allocation7 + $0x1] ss:$0 sm:$0xff]  ;;  %v365_v24 = vld [vmem:[#allocation7 + $0x2] ss:$0 sm:$0xff] }
  0x48   :  { %557 = vmatpush3.bf16.msra.mxu1 %v556_v30 }
  0x49   :  { %558 = vmatprep.subr.bf16.mxu1 %v708_v0 }
  0x4a   :  { %536 = vmatpush3.bf16.msra.mxu0 %v535_v27 }
  0x4b   :  { %537 = vmatprep.subr.bf16.mxu0 %v708_v0 }
  0x4c   :  { %560 = vmatpush3.bf16.msra.mxu1 %v559_v36 }
  0x4d   :  { %561 = vmatprep.subr.bf16.mxu1 %v708_v0 }
  0x4e   :  { %539 = vmatpush3.bf16.msra.mxu0 %v538_v33 }
  0x4f   :  { %540 = vmatprep.subr.bf16.mxu0 %v708_v0 }
  0x50   :  { %563 = vmatpush3.bf16.msra.mxu1 %v562_v42 }
  0x51   :  { %564 = vmatprep.subr.bf16.mxu1 %v708_v0 }
  0x52   :  { %542 = vmatpush3.bf16.msra.mxu0 %v541_v39 }
  0x53   :  { %543 = vmatprep.subr.bf16.mxu0 %v708_v0 }
  0x54   :  { %566 = vmatpush3.bf16.msra.mxu1 %v565_v46 }
  0x55   :  { %567 = vmatprep.subr.bf16.mxu1 %v708_v0 }
  0x56   :  { %545 = vmatpush3.bf16.msra.mxu0 %v544_v45 }
  0x57   :  { %570 = vmatprep.subr.bf16.mxu0 %v708_v0 }
  0x58   :  { %569 = vmatpush3.bf16.msra.mxu1 %v568_v50 }
  0x59   :  { %450 = vmatmul.mubr.f32.vlgmr.msra.gmra.mrb[0].mxu0 %v52_v47 }
  0x5a   :  { %519 = vmatprep.mubr.msk.f32.mxu0 %vm709_vm0, %v710_v1  ;;  %572 = vmatpush3.bf16.msra.mxu0 %v571_v54  ;;  %v246_v1 = vld [vmem:[#allocation5 + $0x148] sm:$0xff] }
  0x5b   :  { %573 = vmatprep.subr.bf16.mxu0 %v708_v0  ;;  %v583_v2 = vpack.c.bf16 %v246_v1, %v245_v63 }
  0x5e   :  { %575 = vmatpush3.bf16.msra.mxu0 %v574_v56 }
  0x5f   :  { %576 = vmatprep.subr.bf16.mxu0 %v708_v0 }
  0x62   :  { %578 = vmatpush3.bf16.msra.mxu0 %v577_v59 }
  0x63   :  { %579 = vmatprep.subr.bf16.mxu0 %v708_v0 }
  0x66   :  { %581 = vmatpush3.bf16.msra.mxu0 %v580_v62 }
  0x67   :  { %582 = vmatprep.subr.bf16.mxu0 %v708_v0 }
  0x6a   :  { %584 = vmatpush3.bf16.msra.mxu0 %v583_v2 }
  0x6b   :  { %585 = vmatprep.subr.bf16.mxu0 %v708_v0 }
  0x6e   :  { %587 = vmatpush3.bf16.msra.mxu0 %v586_v5 }
  0x6f   :  { %588 = vmatprep.subr.bf16.mxu0 %v708_v0 }
  0x72   :  { %590 = vmatpush3.bf16.msra.mxu0 %v589_v8 }
  0x73   :  { %591 = vmatprep.subr.bf16.mxu0 %v708_v0 }
  0x76   :  { %593 = vmatpush3.bf16.msra.mxu0 %v592_v16 }
 0x12c   :  { %v140_v10 = vpop.f32.mrb[0].mxu0 }
 0x12d   :  { %v141_v11 = vadd.f32 %v363_v9, %v140_v10  ;;  %v451_v12 = vpop.f32.mrb[1].mxu0 }
 0x12f   :  { %v144_v13 = vmax.f32 %v141_v11, 0.0 }
 0x131   :  { %485 = vmatmul.mubr.f32.vlgmr.msra.gmra.mrb[0].mxu1 %v144_v13 }
 0x204   :  { %v232_v18 = vpop.f32.mrb[0].mxu1 }
 0x205   :  { %v233_v19 = vadd.f32 %v364_v17, %v232_v18  ;;  %v486_v20 = vpop.f32.mrb[1].mxu1 }
 0x207   :  { %v236_v21 = vmax.f32 %v233_v19, 0.0 }
 0x209   :  { %520 = vmatmul.mubr.f32.vlgmr.msra.gmra.mrb[2].mxu0 %v236_v21 }
 0x2dc   :  { %v324_v0 = vpop.f32.mrb[2].mxu0 }
 0x2dd   :  { %v325_v25 = vadd.f32 %v365_v24, %v324_v0  ;;  %v521_v26 = vpop.f32.mrb[3].mxu0 }
 0x2df   :  { %v331_v27 = vsel %vm330_vm1, %v325_v25, -1e+30 }
 0x2e0   :  { %332 = vmax.xlane.f32.xlu0 %v331_v27 }
 0x36d   :  { %v333_v28 = vpop.xlane.xlu0 %332 }
 0x36e   :  { %v334_v29 = vsub.f32 %v325_v25, %v333_v28 }
 0x370   :  { %v335_v30 = vsel %vm330_vm1, %v334_v29, -1e+30 }
 0x371   :  { %v336_v31 = vmul.f32 1.442695, %v335_v30 }
 0x373   :  { %603 = vpow2.f32 %v336_v31 }
 0x37d   :  { %v604_v32 = vpop.eup %603 }
 0x37e   :  { %338 = vadd.xlane.f32.xlu0 %v604_v32 }
 0x40b   :  { %v339_v33 = vpop.xlane.xlu0 %338 }
 0x40c   :  { %605 = vlog2.f32 %v339_v33 }
 0x40d   :  { %607 = vtanh.f32 %v325_v25 }
 0x416   :  { %v606_v34 = vpop.eup %605 }
 0x417   :  { %v341_v35 = vmul.f32 0.6931472, %v606_v34  ;;  %v608_v37 = vpop.eup %607 }
 0x419   :  { %v342_v36 = vsub.f32 %v334_v29, %v341_v35 }
 0x41b   :  { %v345_v38 = vsel %vm343_vm2, %v608_v37, %v342_v36 }
 0x41c   :  { %346 = vst [vmem:[#allocation8] sm:$0xff] %v345_v38 }
 0x41d   :  { %686 = shalt.err (!%p683_p0)
}
 0x41e   :  { %s687_s25 = scalar_lea.hbm %s813_s3, 128 }
 0x41f   :  { %p688_p1 = scmp.ne.s32.totalorder %s813_s3, %s687_s25  ;;  %p691_p2 = scmp.lt.u32.totalorder %s687_s25, %s813_s3 }
 0x421   :  { %p693_p3 = pnand %p691_p2, %p688_p1 }
 0x423   :  { %696 = shalt.err (!%p693_p3)
}
 0x424   :  { %356 = dma.vmem_to_hbm [thread:$0]  %s354_s21, 128, %s813_s3, [#allocation4]  }
 0x425   :  { %701 = dma.done.wait [#allocation4], 128  }
 0x426   :  { %702 = vsyncadd [#allocation4], 4294967168 }
 0x427   :  { %360 = vsyncpa [#allocation3], 1 }
 0x428   :  { %361 = vsyncpa [#allocation6], 1 }
 0x429   :  { %362 = vsyncpa [#allocation4], 1 }

</bundles_post_ra>
